<compile_context>
chip_gen: v7x
topology: tpu7x:2x2x1
jax: 0.10.0
libtpu: 0.0.40
codegen_flags: <defaults>
</compile_context>

<pallas_src>
import jax
import jax.numpy as jnp
from jax.experimental import pallas as pl
from jax.experimental.pallas import tpu as pltpu


def _round_up(n, m):
    return ((n + m - 1) // m) * m


def _cdiv(a, b):
    return -(-a // b)


def _choose_tb(batch):
    """Batch tile: multiple of 8, capped at 1024, low pad waste, and an even
    number (>=2) of grid steps for larger batches so both v7x TensorCores get
    work under dimension_semantics=("parallel",)."""
    tb_max = 1024
    if batch <= 256:
        return _round_up(batch, 8)      # single tile; tiny problem
    n_tiles = max(2, _cdiv(batch, tb_max))
    if n_tiles % 2:
        n_tiles += 1                    # even #tiles -> balanced across 2 TCs
    return _round_up(_cdiv(batch, n_tiles), 8)


def _default_activation_dtype():
    # bf16 tanh roughly doubles EUP throughput on v6e/v7x (the binding unit on
    # the bf16 matmul path); v5e and older lack bf16 VPU/EUP, keep f32 there.
    try:
        kind = jax.devices()[0].device_kind.lower()
    except Exception:
        return jnp.bfloat16
    if any(v in kind for v in ("v2", "v3", "v4", "v5")):
        return jnp.float32
    return jnp.bfloat16


def mlp_base_forward(x, params, *, matmul_dtype=jnp.bfloat16,
                     activation_dtype=None):
    """x: (B, 10) float32.  params: dict of (in,out) weights and (1,out) biases."""
    B, F = x.shape
    assert F == 10
    if activation_dtype is None:
        activation_dtype = _default_activation_dtype()

    K1 = 128                      # fc1 contraction dim after in-kernel zero-pad
    H = params["w2"].shape[0]     # 256

    # Weights in (in, out) layout (= transpose of torch nn.Linear).  fc1 weight
    # is zero-padded 10->128 rows (tiny, one-time, pinned) to match the
    # in-kernel padded x; all matmul operands cast to matmul_dtype.
    w1 = jnp.pad(params["w1"], ((0, K1 - F), (0, 0))).astype(matmul_dtype)
    w2 = params["w2"].astype(matmul_dtype)
    w3 = params["w3"].astype(matmul_dtype)
    w4 = params["w4"].reshape(1, H).astype(jnp.float32)   # row for VPU reduce
    b1 = params["b1"].astype(jnp.float32)
    b2 = params["b2"].astype(jnp.float32)
    b3 = params["b3"].astype(jnp.float32)
    b4 = params["b4"].astype(jnp.float32)

    TB = _choose_tb(B)
    B_pad = _round_up(B, TB)
    x_in = x if B_pad == B else jnp.pad(x, ((0, B_pad - B), (0, 0)))
    grid = (B_pad // TB,)

    def kernel(x_ref, w1_ref, b1_ref, w2_ref, b2_ref, w3_ref, b3_ref,
               w4_ref, b4_ref, o_ref, xpad_ref):
        def sigmoid(h):
            # Exact rewrite of 1/(1+exp(-h)): one EUP op (tanh) + cheap VPU ops.
            h = h.astype(activation_dtype)
            return 0.5 * (jnp.tanh(0.5 * h) + 1.0)

        # In-VMEM feature pad 10 -> 128.  Zeroed every step (cheap) so the pad
        # lanes are valid regardless of which TensorCore runs which grid step.
        xpad_ref[...] = jnp.zeros_like(xpad_ref)
        xpad_ref[:, 0:F] = x_ref[...]

        x_t = xpad_ref[...].astype(matmul_dtype)                  # (TB, 128)
        h = jnp.dot(x_t, w1_ref[...], preferred_element_type=jnp.float32)
        h = sigmoid(h + b1_ref[...])                              # (TB, 256)

        h = jnp.dot(h.astype(matmul_dtype), w2_ref[...],
                    preferred_element_type=jnp.float32)
        h = sigmoid(h + b2_ref[...])

        h = jnp.dot(h.astype(matmul_dtype), w3_ref[...],
                    preferred_element_type=jnp.float32)
        h = sigmoid(h + b3_ref[...])

        # fc4 (256 -> 1): VPU multiply + cross-lane reduce (XLU) instead of a
        # lane-sparse N=1 MXU matmul; accumulation and bias-add in f32.
        out = jnp.sum(h.astype(jnp.float32) * w4_ref[...],
                      axis=-1, keepdims=True)
        o_ref[...] = (out + b4_ref[...]).astype(o_ref.dtype)      # (TB, 1)

    def pinned(a):
        # Full-array block, constant index map: DMA'd once, VMEM-resident
        # across all batch tiles.  (pl.Buffered(1) would halve its VMEM
        # footprint; skipped as reviewed-minor.)
        return pl.BlockSpec(a.shape, lambda i: (0,) * a.ndim)

    out = pl.pallas_call(
        kernel,
        out_shape=jax.ShapeDtypeStruct((B_pad, 1), jnp.float32),
        grid_spec=pltpu.PrefetchScalarGridSpec(
            num_scalar_prefetch=0,
            grid=grid,
            in_specs=[pl.BlockSpec((TB, F), lambda i: (i, 0)),
                      pinned(w1), pinned(b1),
                      pinned(w2), pinned(b2),
                      pinned(w3), pinned(b3),
                      pinned(w4), pinned(b4)],
            out_specs=pl.BlockSpec((TB, 1), lambda i: (i, 0)),
            scratch_shapes=[pltpu.VMEM((TB, K1), x.dtype)],
        ),
        compiler_params=pltpu.CompilerParams(
            # Batch axis is independent -> shard across v7x's two TensorCores.
            dimension_semantics=("parallel",),
        ),
    )(x_in, w1, b1, w2, b2, w3, b3, w4, b4)

    return out[:B]


def init_params(key):
    """Deterministic init mimicking PyTorch nn.Linear default (uniform +-1/sqrt(fan_in))."""
    dims = [(10, 256), (256, 256), (256, 256), (256, 1)]
    params = {}
    keys = jax.random.split(key, 2 * len(dims))
    for i, (fan_in, fan_out) in enumerate(dims):
        bound = 1.0 / jnp.sqrt(jnp.float32(fan_in))
        w = jax.random.uniform(keys[2 * i], (fan_in, fan_out),
                               minval=-bound, maxval=bound, dtype=jnp.float32)
        b = jax.random.uniform(keys[2 * i + 1], (1, fan_out),
                               minval=-bound, maxval=bound, dtype=jnp.float32)
        params[f"w{i + 1}"] = w
        params[f"b{i + 1}"] = b
    return params


def reference_forward(x, params):
    h = jax.nn.sigmoid(x @ params["w1"] + params["b1"])
    h = jax.nn.sigmoid(h @ params["w2"] + params["b2"])
    h = jax.nn.sigmoid(h @ params["w3"] + params["b3"])
    return h @ params["w4"] + params["b4"]


if __name__ == "__main__":
    key = jax.random.PRNGKey(0)
    k_params, k_x1, k_x2 = jax.random.split(key, 3)
    params = init_params(k_params)

    # Small batch: single grid step; strict f32 check of kernel structure.
    batch = 8
    x = jax.random.normal(k_x1, (batch, 10), dtype=jnp.float32)
    out = jax.block_until_ready(
        mlp_base_forward(x, params, matmul_dtype=jnp.float32,
                         activation_dtype=jnp.float32))
    ref = reference_forward(x, params)
    assert out.shape == (batch, 1)
    assert jnp.allclose(out, ref, atol=1e-5, rtol=1e-5), "f32 mismatch"

    # Larger batch: exercises pad-aware batch tiling (grid=(2,), TB=304), f32.
    batch2 = 600
    x2 = jax.random.normal(k_x2, (batch2, 10), dtype=jnp.float32)
    out2 = jax.block_until_ready(
        mlp_base_forward(x2, params, matmul_dtype=jnp.float32,
                         activation_dtype=jnp.float32))
    ref2 = reference_forward(x2, params)
    assert out2.shape == (batch2, 1)
    assert jnp.allclose(out2, ref2, atol=1e-5, rtol=1e-5), "tiled f32 mismatch"

    # Default fast path: bf16 MXU operands (+ bf16 EUP tanh on v6e/v7x).
    out_fast = jax.block_until_ready(mlp_base_forward(x2, params))
    assert out_fast.shape == (batch2, 1)
    assert jnp.allclose(out_fast, ref2, atol=1e-1, rtol=1e-1), "fast-path mismatch"

    print("KERNEL_OK")
</pallas_src>

<mosaic_0001>
module attributes {stable_mosaic.version = 11 : i64} {
  func.func @kernel(%arg0: i32, %arg1: memref<8x10xf32, #tpu.memory_space<vmem>>, %arg2: memref<128x256xf32, #tpu.memory_space<vmem>>, %arg3: memref<1x256xf32, #tpu.memory_space<vmem>>, %arg4: memref<256x256xf32, #tpu.memory_space<vmem>>, %arg5: memref<1x256xf32, #tpu.memory_space<vmem>>, %arg6: memref<256x256xf32, #tpu.memory_space<vmem>>, %arg7: memref<1x256xf32, #tpu.memory_space<vmem>>, %arg8: memref<1x256xf32, #tpu.memory_space<vmem>>, %arg9: memref<1x1xf32, #tpu.memory_space<vmem>>, %arg10: memref<8x1xf32, #tpu.memory_space<vmem>>, %arg11: memref<8x128xf32, #tpu.memory_space<vmem>>) attributes {dimension_semantics = [#tpu.dimension_semantics<parallel>], iteration_bounds = array<i64: 1>, scalar_prefetch = 0 : i64, scratch_operands = 1 : i64, tpu.core_type = #tpu.core_type<tc>, window_params = [{transform_indices = @transform_0, window_bounds = array<i64: 8, 10>}, {pipeline_mode = #tpu.pipeline_mode<synchronous>, transform_indices = @transform_1, window_bounds = array<i64: 128, 256>}, {pipeline_mode = #tpu.pipeline_mode<synchronous>, transform_indices = @transform_2, window_bounds = array<i64: 1, 256>}, {pipeline_mode = #tpu.pipeline_mode<synchronous>, transform_indices = @transform_3, window_bounds = array<i64: 256, 256>}, {pipeline_mode = #tpu.pipeline_mode<synchronous>, transform_indices = @transform_4, window_bounds = array<i64: 1, 256>}, {pipeline_mode = #tpu.pipeline_mode<synchronous>, transform_indices = @transform_5, window_bounds = array<i64: 256, 256>}, {pipeline_mode = #tpu.pipeline_mode<synchronous>, transform_indices = @transform_6, window_bounds = array<i64: 1, 256>}, {pipeline_mode = #tpu.pipeline_mode<synchronous>, transform_indices = @transform_7, window_bounds = array<i64: 1, 256>}, {pipeline_mode = #tpu.pipeline_mode<synchronous>, transform_indices = @transform_8, window_bounds = array<i64: 1, 1>}, {transform_indices = @transform_9, window_bounds = array<i64: 8, 1>}]} {
    %cst = arith.constant 0.000000e+00 : f32
    %0 = vector.broadcast %cst : f32 to vector<8x128xf32>
    %c0 = arith.constant 0 : index
    %c0_0 = arith.constant 0 : index
    %1 = vector.load %arg11[%c0, %c0_0] : memref<8x128xf32, #tpu.memory_space<vmem>>, vector<8x128xf32>
    tpu.vector_store %arg11[%c0, %c0_0], %0 {strides = array<i32>} : memref<8x128xf32, #tpu.memory_space<vmem>>, vector<8x128xf32>,
    %c0_1 = arith.constant 0 : index
    %c0_2 = arith.constant 0 : index
    %2 = vector.load %arg1[%c0_1, %c0_2] : memref<8x10xf32, #tpu.memory_space<vmem>>, vector<8x10xf32>
    %c0_3 = arith.constant 0 : index
    %c0_4 = arith.constant 0 : index
    %3 = vector.load %arg11[%c0_3, %c0_4] : memref<8x128xf32, #tpu.memory_space<vmem>>, vector<8x10xf32>
    tpu.vector_store %arg11[%c0_3, %c0_4], %2 {strides = array<i32>} : memref<8x128xf32, #tpu.memory_space<vmem>>, vector<8x10xf32>,
    %c0_5 = arith.constant 0 : index
    %c0_6 = arith.constant 0 : index
    %4 = vector.load %arg11[%c0_5, %c0_6] : memref<8x128xf32, #tpu.memory_space<vmem>>, vector<8x128xf32>
    %c0_7 = arith.constant 0 : index
    %c0_8 = arith.constant 0 : index
    %5 = vector.load %arg2[%c0_7, %c0_8] : memref<128x256xf32, #tpu.memory_space<vmem>>, vector<128x256xf32>
    %cst_9 = arith.constant dense<0.000000e+00> : vector<8x256xf32>
    %6 = tpu.matmul %4, %5, %cst_9 {dimension_numbers = #tpu.dot_dimension_numbers<[1], [0], [0], [1], [0, 0, 1, 1], [], []>} : vector<8x128xf32>, vector<128x256xf32>, vector<8x256xf32> -> vector<8x256xf32>
    %c0_10 = arith.constant 0 : index
    %c0_11 = arith.constant 0 : index
    %7 = vector.load %arg3[%c0_10, %c0_11] : memref<1x256xf32, #tpu.memory_space<vmem>>, vector<1x256xf32>
    %8 = vector.broadcast %7 : vector<1x256xf32> to vector<8x256xf32>
    %9 = arith.addf %6, %8 : vector<8x256xf32>
    %cst_12 = arith.constant 5.000000e-01 : f32
    %10 = vector.broadcast %cst_12 : f32 to vector<8x256xf32>
    %11 = arith.mulf %10, %9 : vector<8x256xf32>
    %12 = math.tanh %11 : vector<8x256xf32>
    %cst_13 = arith.constant 1.000000e+00 : f32
    %13 = vector.broadcast %cst_13 : f32 to vector<8x256xf32>
    %14 = arith.addf %12, %13 : vector<8x256xf32>
    %cst_14 = arith.constant 5.000000e-01 : f32
    %15 = vector.broadcast %cst_14 : f32 to vector<8x256xf32>
    %16 = arith.mulf %15, %14 : vector<8x256xf32>
    %c0_15 = arith.constant 0 : index
    %c0_16 = arith.constant 0 : index
    %17 = vector.load %arg4[%c0_15, %c0_16] : memref<256x256xf32, #tpu.memory_space<vmem>>, vector<256x256xf32>
    %cst_17 = arith.constant dense<0.000000e+00> : vector<8x256xf32>
    %18 = tpu.matmul %16, %17, %cst_17 {dimension_numbers = #tpu.dot_dimension_numbers<[1], [0], [0], [1], [0, 0, 1, 1], [], []>} : vector<8x256xf32>, vector<256x256xf32>, vector<8x256xf32> -> vector<8x256xf32>
    %c0_18 = arith.constant 0 : index
    %c0_19 = arith.constant 0 : index
    %19 = vector.load %arg5[%c0_18, %c0_19] : memref<1x256xf32, #tpu.memory_space<vmem>>, vector<1x256xf32>
    %20 = vector.broadcast %19 : vector<1x256xf32> to vector<8x256xf32>
    %21 = arith.addf %18, %20 : vector<8x256xf32>
    %cst_20 = arith.constant 5.000000e-01 : f32
    %22 = vector.broadcast %cst_20 : f32 to vector<8x256xf32>
    %23 = arith.mulf %22, %21 : vector<8x256xf32>
    %24 = math.tanh %23 : vector<8x256xf32>
    %cst_21 = arith.constant 1.000000e+00 : f32
    %25 = vector.broadcast %cst_21 : f32 to vector<8x256xf32>
    %26 = arith.addf %24, %25 : vector<8x256xf32>
    %cst_22 = arith.constant 5.000000e-01 : f32
    %27 = vector.broadcast %cst_22 : f32 to vector<8x256xf32>
    %28 = arith.mulf %27, %26 : vector<8x256xf32>
    %c0_23 = arith.constant 0 : index
    %c0_24 = arith.constant 0 : index
    %29 = vector.load %arg6[%c0_23, %c0_24] : memref<256x256xf32, #tpu.memory_space<vmem>>, vector<256x256xf32>
    %cst_25 = arith.constant dense<0.000000e+00> : vector<8x256xf32>
    %30 = tpu.matmul %28, %29, %cst_25 {dimension_numbers = #tpu.dot_dimension_numbers<[1], [0], [0], [1], [0, 0, 1, 1], [], []>} : vector<8x256xf32>, vector<256x256xf32>, vector<8x256xf32> -> vector<8x256xf32>
    %c0_26 = arith.constant 0 : index
    %c0_27 = arith.constant 0 : index
    %31 = vector.load %arg7[%c0_26, %c0_27] : memref<1x256xf32, #tpu.memory_space<vmem>>, vector<1x256xf32>
    %32 = vector.broadcast %31 : vector<1x256xf32> to vector<8x256xf32>
    %33 = arith.addf %30, %32 : vector<8x256xf32>
    %cst_28 = arith.constant 5.000000e-01 : f32
    %34 = vector.broadcast %cst_28 : f32 to vector<8x256xf32>
    %35 = arith.mulf %34, %33 : vector<8x256xf32>
    %36 = math.tanh %35 : vector<8x256xf32>
    %cst_29 = arith.constant 1.000000e+00 : f32
    %37 = vector.broadcast %cst_29 : f32 to vector<8x256xf32>
    %38 = arith.addf %36, %37 : vector<8x256xf32>
    %cst_30 = arith.constant 5.000000e-01 : f32
    %39 = vector.broadcast %cst_30 : f32 to vector<8x256xf32>
    %40 = arith.mulf %39, %38 : vector<8x256xf32>
    %c0_31 = arith.constant 0 : index
    %c0_32 = arith.constant 0 : index
    %41 = vector.load %arg8[%c0_31, %c0_32] : memref<1x256xf32, #tpu.memory_space<vmem>>, vector<1x256xf32>
    %42 = vector.broadcast %41 : vector<1x256xf32> to vector<8x256xf32>
    %43 = arith.mulf %40, %42 : vector<8x256xf32>
    %cst_33 = arith.constant dense<0.000000e+00> : vector<8xf32>
    %44 = vector.multi_reduction <add>, %43, %cst_33 [1] : vector<8x256xf32> to vector<8xf32>
    %45 = vector.shape_cast %44 : vector<8xf32> to vector<8x1xf32>
    %c0_34 = arith.constant 0 : index
    %c0_35 = arith.constant 0 : index
    %46 = vector.load %arg9[%c0_34, %c0_35] : memref<1x1xf32, #tpu.memory_space<vmem>>, vector<1x1xf32>
    %47 = vector.broadcast %46 : vector<1x1xf32> to vector<8x1xf32>
    %48 = arith.addf %45, %47 : vector<8x1xf32>
    %c0_36 = arith.constant 0 : index
    %c0_37 = arith.constant 0 : index
    %49 = vector.load %arg10[%c0_36, %c0_37] : memref<8x1xf32, #tpu.memory_space<vmem>>, vector<8x1xf32>
    tpu.vector_store %arg10[%c0_36, %c0_37], %48 {strides = array<i32>} : memref<8x1xf32, #tpu.memory_space<vmem>>, vector<8x1xf32>,
    return
  }
  func.func @transform_0(%arg0: i32) -> (i32, i32) {
    %c0_i32 = arith.constant 0 : i32
    %c0_i32_0 = arith.constant 0 : i32
    return %arg0, %c0_i32 : i32, i32
  }
  func.func @transform_1(%arg0: i32) -> (i32, i32) {
    %c0_i32 = arith.constant 0 : i32
    %c0_i32_0 = arith.constant 0 : i32
    %c0_i32_1 = arith.constant 0 : i32
    return %c0_i32, %c0_i32_0 : i32, i32
  }
  func.func @transform_2(%arg0: i32) -> (i32, i32) {
    %c0_i32 = arith.constant 0 : i32
    %c0_i32_0 = arith.constant 0 : i32
    %c0_i32_1 = arith.constant 0 : i32
    return %c0_i32, %c0_i32_0 : i32, i32
  }
  func.func @transform_3(%arg0: i32) -> (i32, i32) {
    %c0_i32 = arith.constant 0 : i32
    %c0_i32_0 = arith.constant 0 : i32
    %c0_i32_1 = arith.constant 0 : i32
    return %c0_i32, %c0_i32_0 : i32, i32
  }
  func.func @transform_4(%arg0: i32) -> (i32, i32) {
    %c0_i32 = arith.constant 0 : i32
    %c0_i32_0 = arith.constant 0 : i32
    %c0_i32_1 = arith.constant 0 : i32
    return %c0_i32, %c0_i32_0 : i32, i32
  }
  func.func @transform_5(%arg0: i32) -> (i32, i32) {
    %c0_i32 = arith.constant 0 : i32
    %c0_i32_0 = arith.constant 0 : i32
    %c0_i32_1 = arith.constant 0 : i32
    return %c0_i32, %c0_i32_0 : i32, i32
  }
  func.func @transform_6(%arg0: i32) -> (i32, i32) {
    %c0_i32 = arith.constant 0 : i32
    %c0_i32_0 = arith.constant 0 : i32
    %c0_i32_1 = arith.constant 0 : i32
    return %c0_i32, %c0_i32_0 : i32, i32
  }
  func.func @transform_7(%arg0: i32) -> (i32, i32) {
    %c0_i32 = arith.constant 0 : i32
    %c0_i32_0 = arith.constant 0 : i32
    %c0_i32_1 = arith.constant 0 : i32
    return %c0_i32, %c0_i32_0 : i32, i32
  }
  func.func @transform_8(%arg0: i32) -> (i32, i32) {
    %c0_i32 = arith.constant 0 : i32
    %c0_i32_0 = arith.constant 0 : i32
    %c0_i32_1 = arith.constant 0 : i32
    return %c0_i32, %c0_i32_0 : i32, i32
  }
  func.func @transform_9(%arg0: i32) -> (i32, i32) {
    %c0_i32 = arith.constant 0 : i32
    %c0_i32_0 = arith.constant 0 : i32
    return %arg0, %c0_i32 : i32, i32
  }
}

</mosaic_0001>

<bundles_post_ra>
// kernel: tpu_custom_call.1
= control target key start
LH: loop header
LB: loop body
LE: loop exit
PB: predicated region body
PF: predicated region fallthrough
CT: control target
= control target key end

     0   :  { %s977_s0 = inlined_call_operand.hbm [shape: f32[8,10], index: 0, kind: input, shape index: {}]   ;;  %s978_s1 = inlined_call_operand.hbm [shape: f32[128,256], index: 1, kind: input, shape index: {}]   ;;  %s979_s2 = inlined_call_operand.vmem [shape: f32[1,256], index: 2, kind: input, shape index: {}]   ;;  %s980_s3 = inlined_call_operand.hbm [shape: f32[256,256], index: 3, kind: input, shape index: {}]   ;;  %s981_s4 = inlined_call_operand.vmem [shape: f32[1,256], index: 4, kind: input, shape index: {}]   ;;  %s982_s5 = inlined_call_operand.hbm [shape: f32[256,256], index: 5, kind: input, shape index: {}]   ;;  %s983_s6 = inlined_call_operand.vmem [shape: f32[1,256], index: 6, kind: input, shape index: {}]   ;;  %s984_s7 = inlined_call_operand.vmem [shape: f32[1,256], index: 7, kind: input, shape index: {}]   ;;  %s985_s8 = inlined_call_operand.<no memory space> [shape: f32[1,1], index: 8, kind: input, shape index: {}]   ;;  %s986_s9 = inlined_call_operand.vmem [shape: f32[8,1], index: 9, kind: output, shape index: {}]  }
   0x1   :  { %v14_v0 = vstv %s985_s8 }
   0x2   :  { %15 = vst [vmem:[#allocation3] sm:$0x1] %v14_v0 }
   0x3   :  { %16 = vsyncpa [#allocation5], 0 }
   0x4   :  { %17 = vsyncpa [#allocation7], 0 }
   0x5   :  { %18 = vsyncpa [#allocation10], 0  ;;  %s833_s11 = smov [#allocation6]   ;;  %s739_s15 = scalar_lea.hbm %s978_s1, 4096 }
   0x6   :  { %s34_s12 = sshll.u32 %s833_s11, 4  ;;  %p740_p0 = scmp.ne.s32.totalorder %s978_s1, %s739_s15  ;;  %s35_s12 = int_to_ptr.vmem [resolvable:$true] %s34_s12 }
   0x7   :  { %p743_p1 = scmp.lt.u32.totalorder %s739_s15, %s978_s1 }
   0x9   :  { %p745_p2 = pnand %p743_p1, %p740_p0 }
   0xb   :  { %748 = shalt.err (!%p745_p2)
}
   0xc   :  { %s749_s8 = scalar_lea.vmem %s35_s12, 4096  ;;  %p754_p4 = scmp.lt.s32.totalorder %s35_s12, %s35_s12 }
   0xd   :  { %p750_p3 = scmp.ne.s32.totalorder %s35_s12, %s749_s8  ;;  %p755_p5 = scmp.lt.s32.totalorder %s749_s8, %s749_s8 }
   0xf   :  { %p756_p6 = por %p755_p5, %p754_p4 }
  0x11   :  { %p757_p7 = pnand %p756_p6, %p750_p3 }
  0x13   :  { %760 = shalt.err (!%p757_p7)
}
  0x14   :  { %s834_s20 = smov 256   ;;  %s835_s21 = smov 16  }
  0x15   :  { %40 = dma.hbm_to_vmem [thread:$0]  %s978_s1, 4096, %s35_s12, [#allocation7], %s834_s20, %s834_s20, %s835_s21  }
  0x16   :  { %s836_s24 = smov [#allocation4]   ;;  %s837_s26 = smov [#allocation8]  }
  0x17   :  { %s25_s25 = sshll.u32 %s836_s24, 4  ;;  %s48_s27 = sshll.u32 %s837_s26, 4  ;;  %s26_s25 = int_to_ptr.vmem [resolvable:$true] %s25_s25  ;;  %s49_s27 = int_to_ptr.vmem [resolvable:$true] %s48_s27 }
  0x18   :  { %s761_s30 = scalar_lea.hbm %s977_s0, 128 }
  0x19   :  { %p762_p8 = scmp.ne.s32.totalorder %s977_s0, %s761_s30  ;;  %p765_p9 = scmp.lt.u32.totalorder %s761_s30, %s977_s0 }
  0x1b   :  { %p767_p10 = pnand %p765_p9, %p762_p8 }
  0x1d   :  { %770 = shalt.err (!%p767_p10)
}
  0x1e   :  { %s771_s1 = scalar_lea.vmem %s26_s25, 128  ;;  %p776_p12 = scmp.lt.s32.totalorder %s26_s25, %s26_s25 }
  0x1f   :  { %p772_p11 = scmp.ne.s32.totalorder %s26_s25, %s771_s1  ;;  %p777_p13 = scmp.lt.s32.totalorder %s771_s1, %s771_s1 }
  0x21   :  { %p778_p0 = por %p777_p13, %p776_p12 }
  0x23   :  { %p779_p1 = pnand %p778_p0, %p772_p11 }
  0x25   :  { %782 = shalt.err (!%p779_p1)
}
  0x26   :  { %28 = dma.hbm_to_vmem [thread:$0]  %s977_s0, 128, %s26_s25, [#allocation5]  }
  0x27   :  { %s783_s18 = scalar_lea.hbm %s980_s3, 8192 }
  0x28   :  { %p784_p2 = scmp.ne.s32.totalorder %s980_s3, %s783_s18  ;;  %p787_p3 = scmp.lt.u32.totalorder %s783_s18, %s980_s3 }
  0x2a   :  { %p789_p4 = pnand %p787_p3, %p784_p2 }
  0x2c   :  { %792 = shalt.err (!%p789_p4)
}
  0x2d   :  { %s793_s24 = scalar_lea.vmem %s49_s27, 8192  ;;  %p798_p6 = scmp.lt.s32.totalorder %s49_s27, %s49_s27 }
  0x2e   :  { %p794_p5 = scmp.ne.s32.totalorder %s49_s27, %s793_s24  ;;  %p799_p7 = scmp.lt.s32.totalorder %s793_s24, %s793_s24 }
  0x30   :  { %p800_p8 = por %p799_p7, %p798_p6 }
  0x32   :  { %p801_p9 = pnand %p800_p8, %p794_p5 }
  0x34   :  { %804 = shalt.err (!%p801_p9)
}
  0x35   :  { %54 = dma.hbm_to_vmem [thread:$0]  %s980_s3, 8192, %s49_s27, [#allocation7], %s834_s20, %s834_s20, %s835_s21  }
  0x36   :  { %s838_s26 = smov [#allocation9]   ;;  %s805_s10 = scalar_lea.hbm %s982_s5, 8192 }
  0x37   :  { %s62_s28 = sshll.u32 %s838_s26, 4  ;;  %p806_p10 = scmp.ne.s32.totalorder %s982_s5, %s805_s10  ;;  %s63_s28 = int_to_ptr.vmem [resolvable:$true] %s62_s28 }
  0x38   :  { %p809_p11 = scmp.lt.u32.totalorder %s805_s10, %s982_s5 }
  0x3a   :  { %p811_p12 = pnand %p809_p11, %p806_p10 }
  0x3c   :  { %814 = shalt.err (!%p811_p12)
}
  0x3d   :  { %s815_s12 = scalar_lea.vmem %s63_s28, 8192  ;;  %p820_p0 = scmp.lt.s32.totalorder %s63_s28, %s63_s28 }
  0x3e   :  { %p816_p13 = scmp.ne.s32.totalorder %s63_s28, %s815_s12  ;;  %p821_p1 = scmp.lt.s32.totalorder %s815_s12, %s815_s12 }
  0x40   :  { %p822_p2 = por %p821_p1, %p820_p0 }
  0x42   :  { %p823_p3 = pnand %p822_p2, %p816_p13 }
  0x44   :  { %826 = shalt.err (!%p823_p3)
}
  0x45   :  { %68 = dma.hbm_to_vmem [thread:$0]  %s982_s5, 8192, %s63_s28, [#allocation10], %s834_s20, %s834_s20, %s835_s21  }
  0x46   :  { %827 = dma.done.wait [#allocation5], 128  }
  0x47   :  { %828 = vsyncadd [#allocation5], 4294967168 }
  0x48   :  { %829 = dma.done.wait [#allocation7], 12288  }
  0x49   :  { %830 = vsyncadd [#allocation7], 4294955008 }
  0x4a   :  { %831 = dma.done.wait [#allocation10], 8192  }
  0x4b   :  { %832 = vsyncadd [#allocation10], 4294959104  ;;  %v839_v1 = vmov 0.0   ;;  %v93_v2 = vld [vmem:[#allocation6 + $0x8] sm:$0xff]  ;;  %v95_v3 = vld [vmem:[#allocation6 + $0x18] sm:$0xff]  ;;  %vm89_vm0 = vcmask 80896  }
  0x4c   :  { %87 = vst [vmem:[#allocation2] sm:$0xff] %v839_v1  ;;  %200 = vmatprep.mubr.f32.mxu0 %v839_v1  ;;  %v92_v4 = vld [vmem:[#allocation6] sm:$0xff]  ;;  %v560_v5 = vpack.c.bf16 %v95_v3, %v93_v2  ;;  %v94_v6 = vld [vmem:[#allocation6 + $0x10] sm:$0xff]  ;;  %v97_v7 = vld [vmem:[#allocation6 + $0x28] sm:$0xff]  ;;  %vm550_vm1 = vcmask 7168  }
  0x4d   :  { %v99_v8 = vld [vmem:[#allocation6 + $0x38] sm:$0xff]  ;;  %v562_v9 = vpack.c.bf16 %v94_v6, %v92_v4  ;;  %v96_v11 = vld [vmem:[#allocation6 + $0x20] sm:$0xff]  ;;  %v98_v12 = vld [vmem:[#allocation6 + $0x30] sm:$0xff] }
  0x4e   :  { %v564_v10 = vpack.c.bf16 %v99_v8, %v97_v7  ;;  %v101_v13 = vld [vmem:[#allocation6 + $0x48] sm:$0xff]  ;;  %561 = vmatprep.subr.bf16.mxu0 %v560_v5  ;;  %v103_v14 = vld [vmem:[#allocation6 + $0x58] sm:$0xff]  ;;  %v566_v15 = vpack.c.bf16 %v98_v12, %v96_v11  ;;  %v100_v17 = vld [vmem:[#allocation6 + $0x40] sm:$0xff] }
  0x4f   :  { %563 = vmatpush1.bf16.msra.mxu0 %v562_v9  ;;  %v568_v16 = vpack.c.bf16 %v103_v14, %v101_v13  ;;  %v102_v18 = vld [vmem:[#allocation6 + $0x50] sm:$0xff]  ;;  %v105_v19 = vld [vmem:[#allocation6 + $0x68] sm:$0xff]  ;;  %v107_v20 = vld [vmem:[#allocation6 + $0x78] sm:$0xff] }
  0x50   :  { %565 = vmatprep.subr.bf16.mxu0 %v564_v10  ;;  %v570_v21 = vpack.c.bf16 %v102_v18, %v100_v17  ;;  %v572_v22 = vpack.c.bf16 %v107_v20, %v105_v19  ;;  %v104_v23 = vld [vmem:[#allocation6 + $0x60] sm:$0xff]  ;;  %v106_v24 = vld [vmem:[#allocation6 + $0x70] sm:$0xff]  ;;  %v109_v25 = vld [vmem:[#allocation6 + $0x88] sm:$0xff] }
  0x51   :  { %v111_v26 = vld [vmem:[#allocation6 + $0x98] sm:$0xff]  ;;  %v108_v28 = vld [vmem:[#allocation6 + $0x80] sm:$0xff]  ;;  %v110_v29 = vld [vmem:[#allocation6 + $0x90] sm:$0xff]  ;;  %v574_v33 = vpack.c.bf16 %v106_v24, %v104_v23 }
  0x52   :  { %v88_v27 = vld [vmem:[#allocation4] sm:$0xff]  ;;  %v216_v30 = vld [vmem:[#allocation8 + $0x8] sm:$0xff]  ;;  %v215_v32 = vld [vmem:[#allocation8] sm:$0xff]  ;;  %v576_v38 = vpack.c.bf16 %v111_v26, %v109_v25  ;;  %v578_v48 = vpack.c.bf16 %v110_v29, %v108_v28 }
  0x53   :  { %567 = vmatpush1.bf16.msra.mxu0 %v566_v15  ;;  %90 = vst.msk [vmem:[#allocation2] sm:$0xff] %vm89_vm0, %v88_v27  ;;  %v218_v31 = vld [vmem:[#allocation8 + $0x18] sm:$0xff]  ;;  %v217_v35 = vld [vmem:[#allocation8 + $0x10] sm:$0xff]  ;;  %v220_v36 = vld [vmem:[#allocation8 + $0x28] sm:$0xff] }
  0x54   :  { %569 = vmatprep.subr.bf16.mxu0 %v568_v16  ;;  %v592_v34 = vpack.c.bf16 %v218_v31, %v216_v30  ;;  %v222_v37 = vld [vmem:[#allocation8 + $0x38] sm:$0xff]  ;;  %v594_v39 = vpack.c.bf16 %v217_v35, %v215_v32  ;;  %v219_v41 = vld [vmem:[#allocation8 + $0x20] sm:$0xff]  ;;  %v221_v42 = vld [vmem:[#allocation8 + $0x30] sm:$0xff] }
  0x55   :  { %v596_v40 = vpack.c.bf16 %v222_v37, %v220_v36  ;;  %v224_v43 = vld [vmem:[#allocation8 + $0x48] sm:$0xff]  ;;  %v115_v45 = vld [vmem:[#allocation6 + $0xb8] sm:$0xff]  ;;  %v598_v47 = vpack.c.bf16 %v221_v42, %v219_v41  ;;  %v112_v49 = vld [vmem:[#allocation6 + $0xa0] sm:$0xff] }
  0x56   :  { %v113_v44 = vld [vmem:[#allocation6 + $0xa8] sm:$0xff]  ;;  %593 = vmatprep.subr.bf16.mxu1 %v592_v34  ;;  %v226_v46 = vld [vmem:[#allocation8 + $0x58] sm:$0xff]  ;;  %v223_v51 = vld [vmem:[#allocation8 + $0x40] sm:$0xff] }
  0x57   :  { %571 = vmatpush1.bf16.msra.mxu0 %v570_v21  ;;  %595 = vmatpush1.bf16.msra.mxu1 %v594_v39  ;;  %v600_v50 = vpack.c.bf16 %v226_v46, %v224_v43  ;;  %v225_v52 = vld [vmem:[#allocation8 + $0x50] sm:$0xff]  ;;  %v580_v53 = vpack.c.bf16 %v115_v45, %v113_v44  ;;  %v228_v55 = vld [vmem:[#allocation8 + $0x68] sm:$0xff]  ;;  %v230_v56 = vld [vmem:[#allocation8 + $0x78] sm:$0xff] }
  0x58   :  { %573 = vmatprep.subr.bf16.mxu0 %v572_v22  ;;  %597 = vmatprep.subr.bf16.mxu1 %v596_v40  ;;  %v114_v54 = vld [vmem:[#allocation6 + $0xb0] sm:$0xff]  ;;  %v117_v57 = vld [vmem:[#allocation6 + $0xc8] sm:$0xff]  ;;  %v119_v58 = vld [vmem:[#allocation6 + $0xd8] sm:$0xff]  ;;  %v602_v59 = vpack.c.bf16 %v225_v52, %v223_v51  ;;  %v604_v62 = vpack.c.bf16 %v230_v56, %v228_v55 }
  0x59   :  { %v582_v60 = vpack.c.bf16 %v114_v54, %v112_v49  ;;  %v116_v61 = vld [vmem:[#allocation6 + $0xc0] sm:$0xff]  ;;  %v229_v0 = vld [vmem:[#allocation8 + $0x70] sm:$0xff]  ;;  %v584_v1 = vpack.c.bf16 %v119_v58, %v117_v57  ;;  %v232_v3 = vld [vmem:[#allocation8 + $0x88] sm:$0xff] }
  0x5a   :  { %v227_v63 = vld [vmem:[#allocation8 + $0x60] sm:$0xff]  ;;  %v118_v2 = vld [vmem:[#allocation6 + $0xd0] sm:$0xff]  ;;  %v234_v4 = vld [vmem:[#allocation8 + $0x98] sm:$0xff] }
  0x5b   :  { %575 = vmatpush1.bf16.msra.mxu0 %v574_v33  ;;  %599 = vmatpush1.bf16.msra.mxu1 %v598_v47  ;;  %v121_v5 = vld [vmem:[#allocation6 + $0xe8] sm:$0xff]  ;;  %v123_v6 = vld [vmem:[#allocation6 + $0xf8] sm:$0xff]  ;;  %v606_v7 = vpack.c.bf16 %v229_v0, %v227_v63  ;;  %v586_v8 = vpack.c.bf16 %v118_v2, %v116_v61  ;;  %v120_v9 = vld [vmem:[#allocation6 + $0xe0] sm:$0xff]  ;;  %v608_v10 = vpack.c.bf16 %v234_v4, %v232_v3 }
  0x5c   :  { %577 = vmatprep.subr.bf16.mxu0 %v576_v38  ;;  %601 = vmatprep.subr.bf16.mxu1 %v600_v50  ;;  %v231_v11 = vld [vmem:[#allocation8 + $0x80] sm:$0xff]  ;;  %v233_v12 = vld [vmem:[#allocation8 + $0x90] sm:$0xff]  ;;  %v588_v13 = vpack.c.bf16 %v123_v6, %v121_v5  ;;  %v236_v15 = vld [vmem:[#allocation8 + $0xa8] sm:$0xff] }
  0x5d   :  { %v122_v14 = vld [vmem:[#allocation6 + $0xf0] sm:$0xff]  ;;  %v238_v16 = vld [vmem:[#allocation8 + $0xb8] sm:$0xff]  ;;  %v610_v17 = vpack.c.bf16 %v233_v12, %v231_v11  ;;  %v235_v20 = vld [vmem:[#allocation8 + $0xa0] sm:$0xff] }
  0x5e   :  { %v590_v18 = vpack.c.bf16 %v122_v14, %v120_v9  ;;  %v612_v19 = vpack.c.bf16 %v238_v16, %v236_v15  ;;  %v237_v21 = vld [vmem:[#allocation8 + $0xb0] sm:$0xff]  ;;  %v240_v22 = vld [vmem:[#allocation8 + $0xc8] sm:$0xff]  ;;  %v242_v23 = vld [vmem:[#allocation8 + $0xd8] sm:$0xff] }
  0x5f   :  { %579 = vmatpush1.bf16.msra.mxu0 %v578_v48  ;;  %603 = vmatpush1.bf16.msra.mxu1 %v602_v59  ;;  %v614_v24 = vpack.c.bf16 %v237_v21, %v235_v20  ;;  %v91_v25 = vld [vmem:[#allocation2] sm:$0xff]  ;;  %v616_v26 = vpack.c.bf16 %v242_v23, %v240_v22  ;;  %v239_v27 = vld [vmem:[#allocation8 + $0xc0] sm:$0xff]  ;;  %v246_v30 = vld [vmem:[#allocation8 + $0xf8] sm:$0xff] }
  0x60   :  { %581 = vmatprep.subr.bf16.mxu0 %v580_v53  ;;  %605 = vmatprep.subr.bf16.mxu1 %v604_v62  ;;  %v241_v28 = vld [vmem:[#allocation8 + $0xd0] sm:$0xff]  ;;  %v244_v29 = vld [vmem:[#allocation8 + $0xe8] sm:$0xff]  ;;  %v243_v33 = vld [vmem:[#allocation8 + $0xe0] sm:$0xff] }
  0x61   :  { %v618_v31 = vpack.c.bf16 %v241_v28, %v239_v27  ;;  %v620_v32 = vpack.c.bf16 %v246_v30, %v244_v29  ;;  %v245_v34 = vld [vmem:[#allocation8 + $0xf0] sm:$0xff]  ;;  %v248_v35 = vld [vmem:[#allocation8 + $0x108] sm:$0xff]  ;;  %v250_v36 = vld [vmem:[#allocation8 + $0x118] sm:$0xff] }
  0x62   :  { %v622_v37 = vpack.c.bf16 %v245_v34, %v243_v33  ;;  %v624_v38 = vpack.c.bf16 %v250_v36, %v248_v35  ;;  %v247_v39 = vld [vmem:[#allocation8 + $0x100] sm:$0xff]  ;;  %v249_v40 = vld [vmem:[#allocation8 + $0x110] sm:$0xff]  ;;  %v252_v41 = vld [vmem:[#allocation8 + $0x128] sm:$0xff] }
  0x63   :  { %583 = vmatpush1.bf16.msra.mxu0 %v582_v60  ;;  %607 = vmatpush1.bf16.msra.mxu1 %v606_v7  ;;  %v254_v42 = vld [vmem:[#allocation8 + $0x138] sm:$0xff]  ;;  %v626_v43 = vpack.c.bf16 %v249_v40, %v247_v39  ;;  %v251_v45 = vld [vmem:[#allocation8 + $0x120] sm:$0xff]  ;;  %v253_v46 = vld [vmem:[#allocation8 + $0x130] sm:$0xff] }
  0x64   :  { %585 = vmatprep.subr.bf16.mxu0 %v584_v1  ;;  %609 = vmatprep.subr.bf16.mxu1 %v608_v10  ;;  %v628_v44 = vpack.c.bf16 %v254_v42, %v252_v41  ;;  %v256_v47 = vld [vmem:[#allocation8 + $0x148] sm:$0xff]  ;;  %v258_v48 = vld [vmem:[#allocation8 + $0x158] sm:$0xff]  ;;  %v630_v49 = vpack.c.bf16 %v253_v46, %v251_v45  ;;  %v255_v51 = vld [vmem:[#allocation8 + $0x140] sm:$0xff] }
  0x65   :  { %v632_v50 = vpack.c.bf16 %v258_v48, %v256_v47  ;;  %v257_v52 = vld [vmem:[#allocation8 + $0x150] sm:$0xff]  ;;  %v260_v54 = vld [vmem:[#allocation8 + $0x168] sm:$0xff]  ;;  %v262_v55 = vld [vmem:[#allocation8 + $0x178] sm:$0xff] }
  0x66   :  { %v634_v53 = vpack.c.bf16 %v257_v52, %v255_v51  ;;  %v636_v56 = vpack.c.bf16 %v262_v55, %v260_v54  ;;  %v259_v57 = vld [vmem:[#allocation8 + $0x160] sm:$0xff]  ;;  %v261_v58 = vld [vmem:[#allocation8 + $0x170] sm:$0xff]  ;;  %v264_v60 = vld [vmem:[#allocation8 + $0x188] sm:$0xff] }
  0x67   :  { %587 = vmatpush1.bf16.msra.mxu0 %v586_v8  ;;  %611 = vmatpush1.bf16.msra.mxu1 %v610_v17  ;;  %v638_v59 = vpack.c.bf16 %v261_v58, %v259_v57  ;;  %v266_v61 = vld [vmem:[#allocation8 + $0x198] sm:$0xff]  ;;  %v263_v63 = vld [vmem:[#allocation8 + $0x180] sm:$0xff]  ;;  %v265_v0 = vld [vmem:[#allocation8 + $0x190] sm:$0xff] }
  0x68   :  { %589 = vmatprep.subr.bf16.mxu0 %v588_v13  ;;  %613 = vmatprep.subr.bf16.mxu1 %v612_v19  ;;  %v640_v62 = vpack.c.bf16 %v266_v61, %v264_v60  ;;  %v642_v1 = vpack.c.bf16 %v265_v0, %v263_v63  ;;  %v268_v2 = vld [vmem:[#allocation8 + $0x1a8] sm:$0xff]  ;;  %v270_v3 = vld [vmem:[#allocation8 + $0x1b8] sm:$0xff]  ;;  %v267_v5 = vld [vmem:[#allocation8 + $0x1a0] sm:$0xff] }
  0x69   :  { %v644_v4 = vpack.c.bf16 %v270_v3, %v268_v2  ;;  %v269_v6 = vld [vmem:[#allocation8 + $0x1b0] sm:$0xff]  ;;  %v272_v8 = vld [vmem:[#allocation8 + $0x1c8] sm:$0xff]  ;;  %v274_v9 = vld [vmem:[#allocation8 + $0x1d8] sm:$0xff] }
  0x6a   :  { %v646_v7 = vpack.c.bf16 %v269_v6, %v267_v5  ;;  %v648_v10 = vpack.c.bf16 %v274_v9, %v272_v8  ;;  %v271_v11 = vld [vmem:[#allocation8 + $0x1c0] sm:$0xff]  ;;  %v273_v12 = vld [vmem:[#allocation8 + $0x1d0] sm:$0xff]  ;;  %v276_v14 = vld [vmem:[#allocation8 + $0x1e8] sm:$0xff] }
  0x6b   :  { %591 = vmatpush1.bf16.msra.mxu0 %v590_v18  ;;  %615 = vmatpush1.bf16.msra.mxu1 %v614_v24  ;;  %v650_v13 = vpack.c.bf16 %v273_v12, %v271_v11  ;;  %v278_v15 = vld [vmem:[#allocation8 + $0x1f8] sm:$0xff]  ;;  %v275_v17 = vld [vmem:[#allocation8 + $0x1e0] sm:$0xff]  ;;  %v277_v18 = vld [vmem:[#allocation8 + $0x1f0] sm:$0xff] }
  0x6c   :  { %617 = vmatprep.subr.bf16.mxu1 %v616_v26  ;;  %v652_v16 = vpack.c.bf16 %v278_v15, %v276_v14  ;;  %v654_v19 = vpack.c.bf16 %v277_v18, %v275_v17  ;;  %v371_v20 = vld [vmem:[#allocation9 + $0x8] sm:$0xff]  ;;  %v373_v21 = vld [vmem:[#allocation9 + $0x18] sm:$0xff]  ;;  %v370_v22 = vld [vmem:[#allocation9] sm:$0xff] }
  0x6d   :  { %v656_v23 = vpack.c.bf16 %v373_v21, %v371_v20  ;;  %v372_v24 = vld [vmem:[#allocation9 + $0x10] sm:$0xff]  ;;  %v377_v26 = vld [vmem:[#allocation9 + $0x38] sm:$0xff]  ;;  %v374_v29 = vld [vmem:[#allocation9 + $0x20] sm:$0xff] }
  0x6e   :  { %201 = vmatmul.mubr.f32.vlgmr.msra.gmra.mrb[0].mxu0 %v91_v25  ;;  %v375_v25 = vld [vmem:[#allocation9 + $0x28] sm:$0xff]  ;;  %v658_v27 = vpack.c.bf16 %v372_v24, %v370_v22  ;;  %v376_v30 = vld [vmem:[#allocation9 + $0x30] sm:$0xff]  ;;  %v378_v35 = vld [vmem:[#allocation9 + $0x40] sm:$0xff]  ;;  %v126_v22 = vlaneseq }
  0x6f   :  { %619 = vmatpush1.bf16.msra.mxu1 %v618_v31  ;;  %v660_v28 = vpack.c.bf16 %v377_v26, %v375_v25  ;;  %v379_v31 = vld [vmem:[#allocation9 + $0x48] sm:$0xff]  ;;  %657 = vmatprep.subr.bf16.mxu0 %v656_v23  ;;  %v662_v33 = vpack.c.bf16 %v376_v30, %v374_v29  ;;  %v380_v36 = vld [vmem:[#allocation9 + $0x50] sm:$0xff]  ;;  %v382_v41 = vld [vmem:[#allocation9 + $0x60] sm:$0xff] }
  0x70   :  { %621 = vmatprep.subr.bf16.mxu1 %v620_v32  ;;  %v381_v32 = vld [vmem:[#allocation9 + $0x58] sm:$0xff]  ;;  %659 = vmatpush1.bf16.msra.mxu0 %v658_v27  ;;  %v666_v39 = vpack.c.bf16 %v380_v36, %v378_v35  ;;  %v384_v42 = vld [vmem:[#allocation9 + $0x70] sm:$0xff]  ;;  %v386_v47 = vld [vmem:[#allocation9 + $0x80] sm:$0xff]  ;;  %v127_v23 = vshrl.u32 %v126_v22, 7 }
  0x71   :  { %661 = vmatprep.subr.bf16.mxu0 %v660_v28  ;;  %v664_v34 = vpack.c.bf16 %v381_v32, %v379_v31  ;;  %v670_v45 = vpack.c.bf16 %v384_v42, %v382_v41  ;;  %v388_v48 = vld [vmem:[#allocation9 + $0x90] sm:$0xff]  ;;  %v395_v55 = vld [vmem:[#allocation9 + $0xc8] sm:$0xff]  ;;  %v417_v42 = vld [vmem:[#allocation9 + $0x178] sm:$0xff] }
  0x72   :  { %v674_v51 = vpack.c.bf16 %v388_v48, %v386_v47  ;;  %v392_v54 = vld [vmem:[#allocation9 + $0xb0] sm:$0xff]  ;;  %v399_v61 = vld [vmem:[#allocation9 + $0xe8] sm:$0xff]  ;;  %v950_v24 = vsub.s32 0, %v127_v23  ;;  %v955_v26 = vsub.s32 1, %v127_v23  ;;  %v421_v48 = vld [vmem:[#allocation9 + $0x198] sm:$0xff] }
  0x73   :  { %623 = vmatpush1.bf16.msra.mxu1 %v622_v37  ;;  %v383_v37 = vld [vmem:[#allocation9 + $0x68] sm:$0xff]  ;;  %v396_v60 = vld [vmem:[#allocation9 + $0xd0] sm:$0xff] }
  0x74   :  { %625 = vmatprep.subr.bf16.mxu1 %v624_v38  ;;  %v385_v38 = vld [vmem:[#allocation9 + $0x78] sm:$0xff]  ;;  %663 = vmatpush1.bf16.msra.mxu0 %v662_v33  ;;  %v400_v2 = vld [vmem:[#allocation9 + $0xf0] sm:$0xff]  ;;  %v403_v3 = vld [vmem:[#allocation9 + $0x108] sm:$0xff] }
  0x75   :  { %665 = vmatprep.subr.bf16.mxu0 %v664_v34  ;;  %v668_v40 = vpack.c.bf16 %v385_v38, %v383_v37  ;;  %v404_v8 = vld [vmem:[#allocation9 + $0x110] sm:$0xff]  ;;  %v407_v9 = vld [vmem:[#allocation9 + $0x128] sm:$0xff] }
  0x76   :  { %v408_v14 = vld [vmem:[#allocation9 + $0x130] sm:$0xff]  ;;  %v411_v15 = vld [vmem:[#allocation9 + $0x148] sm:$0xff] }
  0x77   :  { %627 = vmatpush1.bf16.msra.mxu1 %v626_v43  ;;  %v387_v43 = vld [vmem:[#allocation9 + $0x88] sm:$0xff]  ;;  %v412_v20 = vld [vmem:[#allocation9 + $0x150] sm:$0xff] }
  0x78   :  { %629 = vmatprep.subr.bf16.mxu1 %v628_v44  ;;  %v389_v44 = vld [vmem:[#allocation9 + $0x98] sm:$0xff]  ;;  %667 = vmatpush1.bf16.msra.mxu0 %v666_v39  ;;  %v124_v25 = vld [vmem:[%s979_s2] sm:$0x3] }
  0x79   :  { %669 = vmatprep.subr.bf16.mxu0 %v668_v40  ;;  %v672_v46 = vpack.c.bf16 %v389_v44, %v387_v43  ;;  %v129_v27 = vrot.slane %v124_v25, %v950_v24  ;;  %v133_v28 = vrot.slane %v124_v25, %v955_v26  ;;  %v415_v41 = vld [vmem:[#allocation9 + $0x168] sm:$0xff]  ;;  %v414_v44 = vld [vmem:[#allocation9 + $0x160] sm:$0xff] }
  0x7a   :  { %v700_v43 = vpack.c.bf16 %v417_v42, %v415_v41  ;;  %v419_v47 = vld [vmem:[#allocation9 + $0x188] sm:$0xff] }
  0x7b   :  { %631 = vmatpush1.bf16.msra.mxu1 %v630_v49  ;;  %v391_v49 = vld [vmem:[#allocation9 + $0xa8] sm:$0xff] }
  0x7c   :  { %633 = vmatprep.subr.bf16.mxu1 %v632_v50  ;;  %v393_v50 = vld [vmem:[#allocation9 + $0xb8] sm:$0xff]  ;;  %671 = vmatpush1.bf16.msra.mxu0 %v670_v45  ;;  %v416_v45 = vld [vmem:[#allocation9 + $0x170] sm:$0xff] }
  0x7d   :  { %673 = vmatprep.subr.bf16.mxu0 %v672_v46  ;;  %v676_v52 = vpack.c.bf16 %v393_v50, %v391_v49  ;;  %v702_v46 = vpack.c.bf16 %v416_v45, %v414_v44  ;;  %v704_v49 = vpack.c.bf16 %v421_v48, %v419_v47  ;;  %v418_v50 = vld [vmem:[#allocation9 + $0x180] sm:$0xff]  ;;  %v434_v22 = vld [vmem:[%s983_s6] sm:$0x3]  ;;  %v559_v45 = vld [vmem:[#allocation3] ss:$0 sm:$0xff] }
  0x7e   :  { %v439_v23 = vrot.slane %v434_v22, %v950_v24  ;;  %v443_v25 = vrot.slane %v434_v22, %v955_v26 }
  0x7f   :  { %635 = vmatpush1.bf16.msra.mxu1 %v634_v53  ;;  %v390_v53 = vld [vmem:[#allocation9 + $0xa0] sm:$0xff] }
  0x80   :  { %637 = vmatprep.subr.bf16.mxu1 %v636_v56  ;;  %v397_v56 = vld [vmem:[#allocation9 + $0xd8] sm:$0xff]  ;;  %675 = vmatpush1.bf16.msra.mxu0 %v674_v51  ;;  %v678_v57 = vpack.c.bf16 %v392_v54, %v390_v53  ;;  %v420_v51 = vld [vmem:[#allocation9 + $0x190] sm:$0xff]  ;;  %v423_v53 = vld [vmem:[#allocation9 + $0x1a8] sm:$0xff] }
  0x81   :  { %677 = vmatprep.subr.bf16.mxu0 %v676_v52  ;;  %v680_v58 = vpack.c.bf16 %v397_v56, %v395_v55  ;;  %v706_v52 = vpack.c.bf16 %v420_v51, %v418_v50  ;;  %v425_v54 = vld [vmem:[#allocation9 + $0x1b8] sm:$0xff]  ;;  %v422_v56 = vld [vmem:[#allocation9 + $0x1a0] sm:$0xff] }
  0x82   :  { %v708_v55 = vpack.c.bf16 %v425_v54, %v423_v53 }
  0x83   :  { %639 = vmatpush1.bf16.msra.mxu1 %v638_v59  ;;  %v394_v59 = vld [vmem:[#allocation9 + $0xc0] sm:$0xff] }
  0x84   :  { %641 = vmatprep.subr.bf16.mxu1 %v640_v62  ;;  %v401_v62 = vld [vmem:[#allocation9 + $0xf8] sm:$0xff]  ;;  %679 = vmatpush1.bf16.msra.mxu0 %v678_v57  ;;  %v682_v63 = vpack.c.bf16 %v396_v60, %v394_v59  ;;  %v424_v57 = vld [vmem:[#allocation9 + $0x1b0] sm:$0xff]  ;;  %v427_v59 = vld [vmem:[#allocation9 + $0x1c8] sm:$0xff] }
  0x85   :  { %681 = vmatprep.subr.bf16.mxu0 %v680_v58  ;;  %v684_v0 = vpack.c.bf16 %v401_v62, %v399_v61  ;;  %v710_v58 = vpack.c.bf16 %v424_v57, %v422_v56  ;;  %v429_v60 = vld [vmem:[#allocation9 + $0x1d8] sm:$0xff]  ;;  %v426_v62 = vld [vmem:[#allocation9 + $0x1c0] sm:$0xff] }
  0x86   :  { %v712_v61 = vpack.c.bf16 %v429_v60, %v427_v59 }
  0x87   :  { %643 = vmatpush1.bf16.msra.mxu1 %v642_v1  ;;  %v398_v1 = vld [vmem:[#allocation9 + $0xe0] sm:$0xff] }
  0x88   :  { %645 = vmatprep.subr.bf16.mxu1 %v644_v4  ;;  %v405_v4 = vld [vmem:[#allocation9 + $0x118] sm:$0xff]  ;;  %683 = vmatpush1.bf16.msra.mxu0 %v682_v63  ;;  %v686_v5 = vpack.c.bf16 %v400_v2, %v398_v1  ;;  %v428_v63 = vld [vmem:[#allocation9 + $0x1d0] sm:$0xff]  ;;  %v431_v1 = vld [vmem:[#allocation9 + $0x1e8] sm:$0xff] }
  0x89   :  { %685 = vmatprep.subr.bf16.mxu0 %v684_v0  ;;  %v688_v6 = vpack.c.bf16 %v405_v4, %v403_v3  ;;  %v714_v0 = vpack.c.bf16 %v428_v63, %v426_v62  ;;  %v433_v2 = vld [vmem:[#allocation9 + $0x1f8] sm:$0xff]  ;;  %v430_v4 = vld [vmem:[#allocation9 + $0x1e0] sm:$0xff] }
  0x8a   :  { %v716_v3 = vpack.c.bf16 %v433_v2, %v431_v1 }
  0x8b   :  { %647 = vmatpush1.bf16.msra.mxu1 %v646_v7  ;;  %v402_v7 = vld [vmem:[#allocation9 + $0x100] sm:$0xff] }
  0x8c   :  { %649 = vmatprep.subr.bf16.mxu1 %v648_v10  ;;  %v409_v10 = vld [vmem:[#allocation9 + $0x138] sm:$0xff]  ;;  %687 = vmatpush1.bf16.msra.mxu0 %v686_v5  ;;  %v690_v11 = vpack.c.bf16 %v404_v8, %v402_v7  ;;  %v432_v5 = vld [vmem:[#allocation9 + $0x1f0] sm:$0xff] }
  0x8d   :  { %689 = vmatprep.subr.bf16.mxu0 %v688_v6  ;;  %v692_v12 = vpack.c.bf16 %v409_v10, %v407_v9  ;;  %v718_v6 = vpack.c.bf16 %v432_v5, %v430_v4  ;;  %v279_v7 = vld [vmem:[%s981_s4] sm:$0x3] }
  0x8e   :  { %v284_v8 = vrot.slane %v279_v7, %v950_v24  ;;  %v288_v9 = vrot.slane %v279_v7, %v955_v26 }
  0x8f   :  { %651 = vmatpush1.bf16.msra.mxu1 %v650_v13  ;;  %v406_v13 = vld [vmem:[#allocation9 + $0x120] sm:$0xff] }
  0x90   :  { %653 = vmatprep.subr.bf16.mxu1 %v652_v16  ;;  %v413_v16 = vld [vmem:[#allocation9 + $0x158] sm:$0xff]  ;;  %691 = vmatpush1.bf16.msra.mxu0 %v690_v11  ;;  %v694_v17 = vpack.c.bf16 %v408_v14, %v406_v13 }
  0x91   :  { %693 = vmatprep.subr.bf16.mxu0 %v692_v12  ;;  %v696_v18 = vpack.c.bf16 %v413_v16, %v411_v15 }
  0x93   :  { %655 = vmatpush1.bf16.msra.mxu1 %v654_v19  ;;  %v410_v19 = vld [vmem:[#allocation9 + $0x140] sm:$0xff] }
  0x94   :  { %695 = vmatpush1.bf16.msra.mxu0 %v694_v17  ;;  %v698_v21 = vpack.c.bf16 %v412_v20, %v410_v19 }
  0x95   :  { %697 = vmatprep.subr.bf16.mxu0 %v696_v18 }
  0x98   :  { %699 = vmatpush1.bf16.msra.mxu0 %v698_v21 }
  0x99   :  { %701 = vmatprep.subr.bf16.mxu0 %v700_v43 }
  0x9c   :  { %703 = vmatpush1.bf16.msra.mxu0 %v702_v46 }
  0x9d   :  { %705 = vmatprep.subr.bf16.mxu0 %v704_v49 }
  0xa0   :  { %707 = vmatpush1.bf16.msra.mxu0 %v706_v52 }
  0xa1   :  { %709 = vmatprep.subr.bf16.mxu0 %v708_v55 }
  0xa4   :  { %711 = vmatpush1.bf16.msra.mxu0 %v710_v58 }
  0xa5   :  { %713 = vmatprep.subr.bf16.mxu0 %v712_v61 }
  0xa8   :  { %715 = vmatpush1.bf16.msra.mxu0 %v714_v0 }
  0xa9   :  { %717 = vmatprep.subr.bf16.mxu0 %v716_v3 }
  0xac   :  { %719 = vmatpush1.bf16.msra.mxu0 %v718_v6 }
 0x141   :  { %v202_v29 = vpop.f32.mrb[0].mxu0 }
 0x142   :  { %v203_v30 = vadd.f32 %v202_v29, %v129_v27  ;;  %v204_v31 = vpop.f32.mrb[1].mxu0 }
 0x143   :  { %v205_v32 = vadd.f32 %v204_v31, %v133_v28 }
 0x144   :  { %v207_v33 = vmul.f32 0.5, %v203_v30 }
 0x145   :  { %v208_v34 = vmul.f32 0.5, %v205_v32 }
 0x146   :  { %727 = vtanh.f32 %v207_v33  ;;  %v525_v33 = vld [vmem:[%s984_s7] sm:$0x3] }
 0x147   :  { %729 = vtanh.f32 %v208_v34 }
 0x150   :  { %v728_v35 = vpop.eup %727 }
 0x151   :  { %v730_v36 = vpop.eup %729  ;;  %v211_v37 = vadd.f32 1.0, %v728_v35 }
 0x152   :  { %v212_v38 = vadd.f32 1.0, %v730_v36 }
 0x153   :  { %v213_v40 = vmul.f32 0.5, %v211_v37  ;;  %v530_v37 = vrot.slane %v525_v33, %v950_v24 }
 0x154   :  { %v214_v39 = vmul.f32 0.5, %v212_v38 }
 0x156   :  { %355 = vmatprep.mubr.f32.mxu1 %v214_v39  ;;  %v534_v39 = vrot.slane %v525_v33, %v955_v26 }
 0x157   :  { %356 = vmatmul.mubr.f32.vlgmr.msra.gmra.mrb[0].mxu1 %v213_v40 }
 0x22a   :  { %v357_v10 = vpop.f32.mrb[0].mxu1 }
 0x22b   :  { %v358_v11 = vadd.f32 %v357_v10, %v284_v8  ;;  %v359_v12 = vpop.f32.mrb[1].mxu1 }
 0x22c   :  { %v360_v13 = vadd.f32 %v359_v12, %v288_v9 }
 0x22d   :  { %v362_v14 = vmul.f32 0.5, %v358_v11 }
 0x22e   :  { %v363_v15 = vmul.f32 0.5, %v360_v13 }
 0x22f   :  { %731 = vtanh.f32 %v362_v14 }
 0x230   :  { %733 = vtanh.f32 %v363_v15 }
 0x239   :  { %v732_v16 = vpop.eup %731 }
 0x23a   :  { %v734_v17 = vpop.eup %733  ;;  %v366_v18 = vadd.f32 1.0, %v732_v16 }
 0x23b   :  { %v367_v19 = vadd.f32 1.0, %v734_v17 }
 0x23c   :  { %v368_v21 = vmul.f32 0.5, %v366_v18 }
 0x23d   :  { %v369_v20 = vmul.f32 0.5, %v367_v19 }
 0x23f   :  { %510 = vmatprep.mubr.f32.mxu0 %v369_v20 }
 0x240   :  { %511 = vmatmul.mubr.f32.vlgmr.msra.gmra.mrb[2].mxu0 %v368_v21 }
 0x313   :  { %v512_v27 = vpop.f32.mrb[2].mxu0 }
 0x314   :  { %v513_v28 = vadd.f32 %v512_v27, %v439_v23  ;;  %v514_v29 = vpop.f32.mrb[3].mxu0 }
 0x315   :  { %v515_v30 = vadd.f32 %v514_v29, %v443_v25 }
 0x316   :  { %v517_v31 = vmul.f32 0.5, %v513_v28 }
 0x317   :  { %v518_v32 = vmul.f32 0.5, %v515_v30 }
 0x318   :  { %735 = vtanh.f32 %v517_v31 }
 0x319   :  { %737 = vtanh.f32 %v518_v32 }
 0x322   :  { %v736_v34 = vpop.eup %735 }
 0x323   :  { %v738_v35 = vpop.eup %737  ;;  %v521_v36 = vadd.f32 1.0, %v736_v34 }
 0x324   :  { %v522_v38 = vadd.f32 1.0, %v738_v35 }
 0x325   :  { %v523_v40 = vmul.f32 0.5, %v521_v36 }
 0x326   :  { %v524_v41 = vmul.f32 0.5, %v522_v38 }
 0x327   :  { %v537_v42 = vmul.f32 %v530_v37, %v523_v40 }
 0x328   :  { %v538_v43 = vmul.f32 %v534_v39, %v524_v41 }
 0x32a   :  { %v539_v44 = vadd.f32 %v538_v43, %v537_v42 }
 0x32c   :  { %540 = vadd.xlane.f32.xlu0 %v539_v44 }
 0x3b9   :  { %v541_v46 = vpop.xlane.xlu0 %540 }
 0x3ba   :  { %v549_v47 = vadd.f32 %v559_v45, %v541_v46 }
 0x3bc   :  { %551 = vst.msk [vmem:[%s986_s9] sm:$0xff] %vm550_vm1, %v549_v47 }
 0x3bd   :  { %556 = vsyncpa [#allocation5], 1 }
 0x3be   :  { %557 = vsyncpa [#allocation7], 1 }
 0x3bf   :  { %558 = vsyncpa [#allocation10], 1 }

</bundles_post_ra>
